<compile_context>
chip_gen: v5e
topology: v5e:2x2
jax: 0.10.0
libtpu: 0.0.40
codegen_flags: <defaults>
</compile_context>

<pallas_src>
import functools

import numpy as np
import jax
import jax.numpy as jnp
from jax.experimental import pallas as pl
from jax.experimental.pallas import tpu as pltpu


def _bilinear_matrix(n_in, n_out):
    """1-D interpolation matrix for nn.Upsample(mode='bilinear', align_corners=True)."""
    A = np.zeros((n_out, n_in), dtype=np.float32)
    if n_in == 1:
        A[:, 0] = 1.0
        return A
    scale = (n_in - 1) / (n_out - 1)
    for i in range(n_out):
        src = i * scale
        lo = min(int(np.floor(src)), n_in - 2)
        frac = src - lo
        A[i, lo] += 1.0 - frac
        A[i, lo + 1] += frac
    return A


def _conv_lane_mats(w, W2):
    """Width-folded per-height-tap lane matrices.

    M[a] = sum_b kron(w[:, :, a, b]^T, S_b) with S_b[jj, j] = [jj == j + b], so
    for activations laid out as (rows, cin*W2) the valid conv output at row r
    (all output channels / width positions at once) is  sum_a act[r+a, :] @ M[a].
    """
    Cout, Cin, kh, kw = w.shape
    mats = []
    for a in range(kh):
        M = jnp.zeros((Cin * W2, Cout * W2), jnp.float32)
        for b in range(kw):
            shift = jnp.eye(W2, k=-b, dtype=jnp.float32)                # (W2, W2)
            wab = jnp.transpose(w[:, :, a, b]).astype(jnp.float32)      # (Cin, Cout)
            M = M + jnp.kron(wab, shift)                                 # (Cin*W2, Cout*W2)
        mats.append(M)
    return jnp.stack(mats)                                               # (kh, Cin*W2, Cout*W2)


def _expanding_block_kernel(x_ref, skip_ref, ahs_ref, c1_ref, m2_ref, m3_ref,
                            bcat_ref, b2_ref, b3_ref, o_ref, *, Ha, Hb, ChW2):
    f32 = jnp.float32
    bf16 = jnp.bfloat16

    xb = x_ref[0]                                         # (H, C*W) bf16

    # --- upsample fused into conv1 (k=2 valid, C -> Ch) ----------------------
    # skip already sits in the upper Ch*W2 lanes; C1 is zero-padded on the
    # right so conv1's output lands in the lower Ch*W2 lanes -> the concat for
    # conv2 is just this accumulation (no lane shuffles).
    acc1 = skip_ref[0].astype(f32) + bcat_ref[...]        # (H1, C*W2)
    for a in range(2):
        u = jnp.dot(ahs_ref[a], xb, preferred_element_type=f32)         # (H1, C*W)
        acc1 = acc1 + jnp.dot(u.astype(bf16), c1_ref[a],
                              preferred_element_type=f32)               # (H1, C*W2)
    cat = acc1.astype(bf16)                               # concat([conv1_out, skip])

    # --- conv2: 3x3 valid, merged K = C*W2 contraction, ReLU -----------------
    acc2 = jnp.broadcast_to(b2_ref[...], (Ha, ChW2))
    for a in range(3):
        acc2 = acc2 + jnp.dot(cat[a:a + Ha, :], m2_ref[a],
                              preferred_element_type=f32)
    mid = jnp.maximum(acc2, 0.0).astype(bf16)             # (Ha, Ch*W2)

    # --- conv3: 3x3 valid, Ch -> Ch, ReLU ------------------------------------
    acc3 = jnp.broadcast_to(b3_ref[...], (Hb, ChW2))
    for a in range(3):
        acc3 = acc3 + jnp.dot(mid[a:a + Hb, :], m3_ref[a],
                              preferred_element_type=f32)
    o_ref[0] = jnp.maximum(acc3, 0.0)                     # lane-dense (Hb, Ch*W2) store


def expanding_block(x, skip_x, params):
    N, C, H, W = x.shape
    assert C % 2 == 0
    Ch = C // 2
    Ns, Cs, Hs, Ws = skip_x.shape
    assert Ns == N and Cs == Ch
    H2, W2 = 2 * H, 2 * W
    H1, W1 = H2 - 1, W2 - 1        # after conv1 (k=2, valid)
    Ha, Wa = H1 - 2, W1 - 2        # after conv2 (k=3, valid)
    Hb, Wb = Ha - 2, Wa - 2        # after conv3 (k=3, valid)
    f32, bf16 = jnp.float32, jnp.bfloat16
    CW, CW2, ChW2 = C * W, C * W2, Ch * W2

    # ---- wrapper-side layout plumbing (reshape/transpose/pad only) ----------
    x_t = jnp.transpose(x, (0, 2, 1, 3)).reshape(N, H, CW).astype(bf16)

    hs = (Hs - H1) // 2
    ws = (Ws - W1) // 2
    skip_c = skip_x[:, :, hs:hs + H1, ws:ws + W1]                        # center crop
    skip_p = jnp.pad(skip_c, ((0, 0), (0, 0), (0, 0), (0, W2 - W1)))     # width -> W2
    skip_l = jnp.transpose(skip_p, (0, 2, 1, 3)).reshape(N, H1, ChW2)
    skip_w = jnp.pad(skip_l, ((0, 0), (0, 0), (ChW2, 0))).astype(bf16)   # upper lanes

    # ---- host-built matmul operands (bf16 on the MXU, f32 accumulation) -----
    A_h = jnp.asarray(_bilinear_matrix(H, H2))                           # (H2, H)
    A_w = jnp.asarray(_bilinear_matrix(W, W2))                           # (W2, W)
    Bw = jnp.kron(jnp.eye(C, dtype=f32), jnp.transpose(A_w))             # (C*W, C*W2)

    AHS = jnp.stack([A_h[a:a + H1] for a in range(2)]).astype(bf16)      # (2, H1, H)

    M1 = _conv_lane_mats(params["w1"], W2)                               # (2, C*W2, Ch*W2)
    C1 = jnp.stack([Bw @ M1[a] for a in range(2)])                       # (2, C*W, Ch*W2)
    C1W = jnp.pad(C1, ((0, 0), (0, 0), (0, ChW2))).astype(bf16)          # (2, C*W, C*W2)

    M2 = _conv_lane_mats(params["w2"], W2).astype(bf16)                  # (3, C*W2, Ch*W2)
    M3 = _conv_lane_mats(params["w3"], W2).astype(bf16)                  # (3, Ch*W2, Ch*W2)

    bcat = jnp.concatenate([jnp.repeat(params["b1"].astype(f32), W2),
                            jnp.zeros((ChW2,), f32)])[None, :]           # (1, C*W2)
    b2r = jnp.repeat(params["b2"].astype(f32), W2)[None, :]              # (1, Ch*W2)
    b3r = jnp.repeat(params["b3"].astype(f32), W2)[None, :]              # (1, Ch*W2)

    kernel = functools.partial(_expanding_block_kernel, Ha=Ha, Hb=Hb, ChW2=ChW2)

    def const(shape):
        return pl.BlockSpec(shape, lambda n: (0,) * len(shape))

    out_flat = pl.pallas_call(
        kernel,
        out_shape=jax.ShapeDtypeStruct((N, Hb, ChW2), f32),
        grid=(N,),
        in_specs=[
            pl.BlockSpec((1, H, CW), lambda n: (n, 0, 0)),
            pl.BlockSpec((1, H1, CW2), lambda n: (n, 0, 0)),
            const((2, H1, H)),
            const((2, CW, CW2)),
            const((3, CW2, ChW2)),
            const((3, ChW2, ChW2)),
            const((1, CW2)),
            const((1, ChW2)),
            const((1, ChW2)),
        ],
        out_specs=pl.BlockSpec((1, Hb, ChW2), lambda n: (n, 0, 0)),
        compiler_params=pltpu.CompilerParams(
            dimension_semantics=("parallel",)),   # 2 images -> both v7x TCs busy
    )(x_t, skip_w, AHS, C1W, M2, M3, bcat, b2r, b3r)

    # back to NCHW, drop the padded/garbage lanes
    out = jnp.transpose(out_flat.reshape(N, Hb, Ch, W2), (0, 2, 1, 3))[:, :, :, :Wb]
    return out


def _reference(x, skip_x, params):
    """Pure-JAX reference reproducing the PyTorch forward semantics (f32)."""
    N, C, H, W = x.shape
    A_h = jnp.asarray(_bilinear_matrix(H, 2 * H))
    A_w = jnp.asarray(_bilinear_matrix(W, 2 * W))
    up = jnp.einsum("ih,nchw,jw->ncij", A_h, x, A_w)

    def conv(z, w, b):
        y = jax.lax.conv_general_dilated(
            z, w, (1, 1), "VALID", dimension_numbers=("NCHW", "OIHW", "NCHW"))
        return y + b[None, :, None, None]

    y = conv(up, params["w1"], params["b1"])
    h, w_ = y.shape[2], y.shape[3]
    hs = (skip_x.shape[2] - h) // 2
    ws = (skip_x.shape[3] - w_) // 2
    y = jnp.concatenate([y, skip_x[:, :, hs:hs + h, ws:ws + w_]], axis=1)
    y = jax.nn.relu(conv(y, params["w2"], params["b2"]))
    y = jax.nn.relu(conv(y, params["w3"], params["b3"]))
    return y


if __name__ == "__main__":
    key = jax.random.PRNGKey(0)
    ks = jax.random.split(key, 8)

    N, C, H, W = 2, 4, 16, 16
    Ch = C // 2
    Hs = Ws = 2 * H + 2  # skip feature map slightly larger than conv1 output

    x = jax.random.normal(ks[0], (N, C, H, W), jnp.float32)
    skip_x = jax.random.normal(ks[1], (N, Ch, Hs, Ws), jnp.float32)
    params = {
        "w1": jax.random.normal(ks[2], (Ch, C, 2, 2), jnp.float32) * 0.1,
        "b1": jax.random.normal(ks[3], (Ch,), jnp.float32) * 0.1,
        "w2": jax.random.normal(ks[4], (Ch, C, 3, 3), jnp.float32) * 0.1,
        "b2": jax.random.normal(ks[5], (Ch,), jnp.float32) * 0.1,
        "w3": jax.random.normal(ks[6], (Ch, Ch, 3, 3), jnp.float32) * 0.1,
        "b3": jax.random.normal(ks[7], (Ch,), jnp.float32) * 0.1,
    }

    out = jax.block_until_ready(expanding_block(x, skip_x, params))
    ref = _reference(x, skip_x, params)

    assert out.shape == ref.shape == (N, Ch, 2 * H - 5, 2 * W - 5), out.shape
    # bf16 MXU operands with f32 accumulation -> relaxed tolerance.
    assert jnp.allclose(out, ref, atol=5e-2, rtol=5e-2), \
        float(jnp.max(jnp.abs(out - ref)))
    print("KERNEL_OK")
</pallas_src>

<mosaic_0001>
module attributes {stable_mosaic.version = 11 : i64} {
  func.func @_expanding_block_kernel(%arg0: i32, %arg1: memref<1x16x64xbf16, #tpu.memory_space<vmem>>, %arg2: memref<1x31x128xbf16, #tpu.memory_space<vmem>>, %arg3: memref<2x31x16xbf16, #tpu.memory_space<vmem>>, %arg4: memref<2x64x128xbf16, #tpu.memory_space<vmem>>, %arg5: memref<3x128x64xbf16, #tpu.memory_space<vmem>>, %arg6: memref<3x64x64xbf16, #tpu.memory_space<vmem>>, %arg7: memref<1x128xf32, #tpu.memory_space<vmem>>, %arg8: memref<1x64xf32, #tpu.memory_space<vmem>>, %arg9: memref<1x64xf32, #tpu.memory_space<vmem>>, %arg10: memref<1x27x64xf32, #tpu.memory_space<vmem>>) attributes {dimension_semantics = [#tpu.dimension_semantics<parallel>], iteration_bounds = array<i64: 2>, scalar_prefetch = 0 : i64, scratch_operands = 0 : i64, tpu.core_type = #tpu.core_type<tc>, window_params = [{transform_indices = @transform_0, window_bounds = array<i64: 1, 16, 64>}, {transform_indices = @transform_1, window_bounds = array<i64: 1, 31, 128>}, {pipeline_mode = #tpu.pipeline_mode<synchronous>, transform_indices = @transform_2, window_bounds = array<i64: 2, 31, 16>}, {pipeline_mode = #tpu.pipeline_mode<synchronous>, transform_indices = @transform_3, window_bounds = array<i64: 2, 64, 128>}, {pipeline_mode = #tpu.pipeline_mode<synchronous>, transform_indices = @transform_4, window_bounds = array<i64: 3, 128, 64>}, {pipeline_mode = #tpu.pipeline_mode<synchronous>, transform_indices = @transform_5, window_bounds = array<i64: 3, 64, 64>}, {pipeline_mode = #tpu.pipeline_mode<synchronous>, transform_indices = @transform_6, window_bounds = array<i64: 1, 128>}, {pipeline_mode = #tpu.pipeline_mode<synchronous>, transform_indices = @transform_7, window_bounds = array<i64: 1, 64>}, {pipeline_mode = #tpu.pipeline_mode<synchronous>, transform_indices = @transform_8, window_bounds = array<i64: 1, 64>}, {transform_indices = @transform_9, window_bounds = array<i64: 1, 27, 64>}]} {
    %c0 = arith.constant 0 : index
    %c0_0 = arith.constant 0 : index
    %c0_1 = arith.constant 0 : index
    %0 = vector.load %arg1[%c0, %c0_0, %c0_1] : memref<1x16x64xbf16, #tpu.memory_space<vmem>>, vector<1x16x64xbf16>
    %1 = vector.shape_cast %0 : vector<1x16x64xbf16> to vector<16x64xbf16>
    %c0_2 = arith.constant 0 : index
    %c0_3 = arith.constant 0 : index
    %c0_4 = arith.constant 0 : index
    %2 = vector.load %arg2[%c0_2, %c0_3, %c0_4] : memref<1x31x128xbf16, #tpu.memory_space<vmem>>, vector<1x31x128xbf16>
    %3 = vector.shape_cast %2 : vector<1x31x128xbf16> to vector<31x128xbf16>
    %4 = arith.extf %3 : vector<31x128xbf16> to vector<31x128xf32>
    %c0_5 = arith.constant 0 : index
    %c0_6 = arith.constant 0 : index
    %5 = vector.load %arg7[%c0_5, %c0_6] : memref<1x128xf32, #tpu.memory_space<vmem>>, vector<1x128xf32>
    %6 = vector.broadcast %5 : vector<1x128xf32> to vector<31x128xf32>
    %7 = arith.addf %4, %6 : vector<31x128xf32>
    %c0_7 = arith.constant 0 : index
    %c0_8 = arith.constant 0 : index
    %c0_9 = arith.constant 0 : index
    %8 = vector.load %arg3[%c0_7, %c0_8, %c0_9] : memref<2x31x16xbf16, #tpu.memory_space<vmem>>, vector<1x31x16xbf16>
    %9 = vector.shape_cast %8 : vector<1x31x16xbf16> to vector<31x16xbf16>
    %cst = arith.constant dense<0.000000e+00> : vector<31x64xf32>
    %10 = tpu.matmul %9, %1, %cst {dimension_numbers = #tpu.dot_dimension_numbers<[1], [0], [0], [1], [0, 0, 1, 1], [], []>} : vector<31x16xbf16>, vector<16x64xbf16>, vector<31x64xf32> -> vector<31x64xf32>
    %11 = arith.truncf %10 : vector<31x64xf32> to vector<31x64xbf16>
    %c0_10 = arith.constant 0 : index
    %c0_11 = arith.constant 0 : index
    %c0_12 = arith.constant 0 : index
    %12 = vector.load %arg4[%c0_10, %c0_11, %c0_12] : memref<2x64x128xbf16, #tpu.memory_space<vmem>>, vector<1x64x128xbf16>
    %13 = vector.shape_cast %12 : vector<1x64x128xbf16> to vector<64x128xbf16>
    %cst_13 = arith.constant dense<0.000000e+00> : vector<31x128xf32>
    %14 = tpu.matmul %11, %13, %cst_13 {dimension_numbers = #tpu.dot_dimension_numbers<[1], [0], [0], [1], [0, 0, 1, 1], [], []>} : vector<31x64xbf16>, vector<64x128xbf16>, vector<31x128xf32> -> vector<31x128xf32>
    %15 = arith.addf %7, %14 : vector<31x128xf32>
    %c1 = arith.constant 1 : index
    %c0_14 = arith.constant 0 : index
    %c0_15 = arith.constant 0 : index
    %16 = vector.load %arg3[%c1, %c0_14, %c0_15] : memref<2x31x16xbf16, #tpu.memory_space<vmem>>, vector<1x31x16xbf16>
    %17 = vector.shape_cast %16 : vector<1x31x16xbf16> to vector<31x16xbf16>
    %cst_16 = arith.constant dense<0.000000e+00> : vector<31x64xf32>
    %18 = tpu.matmul %17, %1, %cst_16 {dimension_numbers = #tpu.dot_dimension_numbers<[1], [0], [0], [1], [0, 0, 1, 1], [], []>} : vector<31x16xbf16>, vector<16x64xbf16>, vector<31x64xf32> -> vector<31x64xf32>
    %19 = arith.truncf %18 : vector<31x64xf32> to vector<31x64xbf16>
    %c1_17 = arith.constant 1 : index
    %c0_18 = arith.constant 0 : index
    %c0_19 = arith.constant 0 : index
    %20 = vector.load %arg4[%c1_17, %c0_18, %c0_19] : memref<2x64x128xbf16, #tpu.memory_space<vmem>>, vector<1x64x128xbf16>
    %21 = vector.shape_cast %20 : vector<1x64x128xbf16> to vector<64x128xbf16>
    %cst_20 = arith.constant dense<0.000000e+00> : vector<31x128xf32>
    %22 = tpu.matmul %19, %21, %cst_20 {dimension_numbers = #tpu.dot_dimension_numbers<[1], [0], [0], [1], [0, 0, 1, 1], [], []>} : vector<31x64xbf16>, vector<64x128xbf16>, vector<31x128xf32> -> vector<31x128xf32>
    %23 = arith.addf %15, %22 : vector<31x128xf32>
    %24 = arith.truncf %23 : vector<31x128xf32> to vector<31x128xbf16>
    %c0_21 = arith.constant 0 : index
    %c0_22 = arith.constant 0 : index
    %25 = vector.load %arg8[%c0_21, %c0_22] : memref<1x64xf32, #tpu.memory_space<vmem>>, vector<1x64xf32>
    %26 = vector.shape_cast %25 : vector<1x64xf32> to vector<1x64xf32>
    %27 = vector.broadcast %26 : vector<1x64xf32> to vector<29x64xf32>
    %28 = vector.extract_strided_slice %24 {offsets = [0, 0], sizes = [29, 128], strides = [1, 1]} : vector<31x128xbf16> to vector<29x128xbf16>
    %c0_23 = arith.constant 0 : index
    %c0_24 = arith.constant 0 : index
    %c0_25 = arith.constant 0 : index
    %29 = vector.load %arg5[%c0_23, %c0_24, %c0_25] : memref<3x128x64xbf16, #tpu.memory_space<vmem>>, vector<1x128x64xbf16>
    %30 = vector.shape_cast %29 : vector<1x128x64xbf16> to vector<128x64xbf16>
    %cst_26 = arith.constant dense<0.000000e+00> : vector<29x64xf32>
    %31 = tpu.matmul %28, %30, %cst_26 {dimension_numbers = #tpu.dot_dimension_numbers<[1], [0], [0], [1], [0, 0, 1, 1], [], []>} : vector<29x128xbf16>, vector<128x64xbf16>, vector<29x64xf32> -> vector<29x64xf32>
    %32 = arith.addf %27, %31 : vector<29x64xf32>
    %33 = vector.extract_strided_slice %24 {offsets = [1, 0], sizes = [29, 128], strides = [1, 1]} : vector<31x128xbf16> to vector<29x128xbf16>
    %c1_27 = arith.constant 1 : index
    %c0_28 = arith.constant 0 : index
    %c0_29 = arith.constant 0 : index
    %34 = vector.load %arg5[%c1_27, %c0_28, %c0_29] : memref<3x128x64xbf16, #tpu.memory_space<vmem>>, vector<1x128x64xbf16>
    %35 = vector.shape_cast %34 : vector<1x128x64xbf16> to vector<128x64xbf16>
    %cst_30 = arith.constant dense<0.000000e+00> : vector<29x64xf32>
    %36 = tpu.matmul %33, %35, %cst_30 {dimension_numbers = #tpu.dot_dimension_numbers<[1], [0], [0], [1], [0, 0, 1, 1], [], []>} : vector<29x128xbf16>, vector<128x64xbf16>, vector<29x64xf32> -> vector<29x64xf32>
    %37 = arith.addf %32, %36 : vector<29x64xf32>
    %38 = vector.extract_strided_slice %24 {offsets = [2, 0], sizes = [29, 128], strides = [1, 1]} : vector<31x128xbf16> to vector<29x128xbf16>
    %c2 = arith.constant 2 : index
    %c0_31 = arith.constant 0 : index
    %c0_32 = arith.constant 0 : index
    %39 = vector.load %arg5[%c2, %c0_31, %c0_32] : memref<3x128x64xbf16, #tpu.memory_space<vmem>>, vector<1x128x64xbf16>
    %40 = vector.shape_cast %39 : vector<1x128x64xbf16> to vector<128x64xbf16>
    %cst_33 = arith.constant dense<0.000000e+00> : vector<29x64xf32>
    %41 = tpu.matmul %38, %40, %cst_33 {dimension_numbers = #tpu.dot_dimension_numbers<[1], [0], [0], [1], [0, 0, 1, 1], [], []>} : vector<29x128xbf16>, vector<128x64xbf16>, vector<29x64xf32> -> vector<29x64xf32>
    %42 = arith.addf %37, %41 : vector<29x64xf32>
    %cst_34 = arith.constant 0.000000e+00 : f32
    %43 = vector.broadcast %cst_34 : f32 to vector<29x64xf32>
    %44 = arith.maximumf %42, %43 : vector<29x64xf32>
    %45 = arith.truncf %44 : vector<29x64xf32> to vector<29x64xbf16>
    %c0_35 = arith.constant 0 : index
    %c0_36 = arith.constant 0 : index
    %46 = vector.load %arg9[%c0_35, %c0_36] : memref<1x64xf32, #tpu.memory_space<vmem>>, vector<1x64xf32>
    %47 = vector.shape_cast %46 : vector<1x64xf32> to vector<1x64xf32>
    %48 = vector.broadcast %47 : vector<1x64xf32> to vector<27x64xf32>
    %49 = vector.extract_strided_slice %45 {offsets = [0, 0], sizes = [27, 64], strides = [1, 1]} : vector<29x64xbf16> to vector<27x64xbf16>
    %c0_37 = arith.constant 0 : index
    %c0_38 = arith.constant 0 : index
    %c0_39 = arith.constant 0 : index
    %50 = vector.load %arg6[%c0_37, %c0_38, %c0_39] : memref<3x64x64xbf16, #tpu.memory_space<vmem>>, vector<1x64x64xbf16>
    %51 = vector.shape_cast %50 : vector<1x64x64xbf16> to vector<64x64xbf16>
    %cst_40 = arith.constant dense<0.000000e+00> : vector<27x64xf32>
    %52 = tpu.matmul %49, %51, %cst_40 {dimension_numbers = #tpu.dot_dimension_numbers<[1], [0], [0], [1], [0, 0, 1, 1], [], []>} : vector<27x64xbf16>, vector<64x64xbf16>, vector<27x64xf32> -> vector<27x64xf32>
    %53 = arith.addf %48, %52 : vector<27x64xf32>
    %54 = vector.extract_strided_slice %45 {offsets = [1, 0], sizes = [27, 64], strides = [1, 1]} : vector<29x64xbf16> to vector<27x64xbf16>
    %c1_41 = arith.constant 1 : index
    %c0_42 = arith.constant 0 : index
    %c0_43 = arith.constant 0 : index
    %55 = vector.load %arg6[%c1_41, %c0_42, %c0_43] : memref<3x64x64xbf16, #tpu.memory_space<vmem>>, vector<1x64x64xbf16>
    %56 = vector.shape_cast %55 : vector<1x64x64xbf16> to vector<64x64xbf16>
    %cst_44 = arith.constant dense<0.000000e+00> : vector<27x64xf32>
    %57 = tpu.matmul %54, %56, %cst_44 {dimension_numbers = #tpu.dot_dimension_numbers<[1], [0], [0], [1], [0, 0, 1, 1], [], []>} : vector<27x64xbf16>, vector<64x64xbf16>, vector<27x64xf32> -> vector<27x64xf32>
    %58 = arith.addf %53, %57 : vector<27x64xf32>
    %59 = vector.extract_strided_slice %45 {offsets = [2, 0], sizes = [27, 64], strides = [1, 1]} : vector<29x64xbf16> to vector<27x64xbf16>
    %c2_45 = arith.constant 2 : index
    %c0_46 = arith.constant 0 : index
    %c0_47 = arith.constant 0 : index
    %60 = vector.load %arg6[%c2_45, %c0_46, %c0_47] : memref<3x64x64xbf16, #tpu.memory_space<vmem>>, vector<1x64x64xbf16>
    %61 = vector.shape_cast %60 : vector<1x64x64xbf16> to vector<64x64xbf16>
    %cst_48 = arith.constant dense<0.000000e+00> : vector<27x64xf32>
    %62 = tpu.matmul %59, %61, %cst_48 {dimension_numbers = #tpu.dot_dimension_numbers<[1], [0], [0], [1], [0, 0, 1, 1], [], []>} : vector<27x64xbf16>, vector<64x64xbf16>, vector<27x64xf32> -> vector<27x64xf32>
    %63 = arith.addf %58, %62 : vector<27x64xf32>
    %cst_49 = arith.constant 0.000000e+00 : f32
    %64 = vector.broadcast %cst_49 : f32 to vector<27x64xf32>
    %65 = arith.maximumf %63, %64 : vector<27x64xf32>
    %c0_50 = arith.constant 0 : index
    %c0_51 = arith.constant 0 : index
    %c0_52 = arith.constant 0 : index
    %66 = vector.load %arg10[%c0_50, %c0_51, %c0_52] : memref<1x27x64xf32, #tpu.memory_space<vmem>>, vector<1x27x64xf32>
    %67 = vector.shape_cast %66 : vector<1x27x64xf32> to vector<27x64xf32>
    %68 = vector.shape_cast %65 : vector<27x64xf32> to vector<1x27x64xf32>
    tpu.vector_store %arg10[%c0_50, %c0_51, %c0_52], %68 {strides = array<i32>} : memref<1x27x64xf32, #tpu.memory_space<vmem>>, vector<1x27x64xf32>,
    return
  }
  func.func @transform_0(%arg0: i32) -> (i32, i32, i32) {
    %c0_i32 = arith.constant 0 : i32
    %c0_i32_0 = arith.constant 0 : i32
    %c0_i32_1 = arith.constant 0 : i32
    return %arg0, %c0_i32, %c0_i32_0 : i32, i32, i32
  }
  func.func @transform_1(%arg0: i32) -> (i32, i32, i32) {
    %c0_i32 = arith.constant 0 : i32
    %c0_i32_0 = arith.constant 0 : i32
    %c0_i32_1 = arith.constant 0 : i32
    return %arg0, %c0_i32, %c0_i32_0 : i32, i32, i32
  }
  func.func @transform_2(%arg0: i32) -> (i32, i32, i32) {
    %c0_i32 = arith.constant 0 : i32
    %c0_i32_0 = arith.constant 0 : i32
    %c0_i32_1 = arith.constant 0 : i32
    %c0_i32_2 = arith.constant 0 : i32
    return %c0_i32, %c0_i32_0, %c0_i32_1 : i32, i32, i32
  }
  func.func @transform_3(%arg0: i32) -> (i32, i32, i32) {
    %c0_i32 = arith.constant 0 : i32
    %c0_i32_0 = arith.constant 0 : i32
    %c0_i32_1 = arith.constant 0 : i32
    %c0_i32_2 = arith.constant 0 : i32
    return %c0_i32, %c0_i32_0, %c0_i32_1 : i32, i32, i32
  }
  func.func @transform_4(%arg0: i32) -> (i32, i32, i32) {
    %c0_i32 = arith.constant 0 : i32
    %c0_i32_0 = arith.constant 0 : i32
    %c0_i32_1 = arith.constant 0 : i32
    %c0_i32_2 = arith.constant 0 : i32
    return %c0_i32, %c0_i32_0, %c0_i32_1 : i32, i32, i32
  }
  func.func @transform_5(%arg0: i32) -> (i32, i32, i32) {
    %c0_i32 = arith.constant 0 : i32
    %c0_i32_0 = arith.constant 0 : i32
    %c0_i32_1 = arith.constant 0 : i32
    %c0_i32_2 = arith.constant 0 : i32
    return %c0_i32, %c0_i32_0, %c0_i32_1 : i32, i32, i32
  }
  func.func @transform_6(%arg0: i32) -> (i32, i32) {
    %c0_i32 = arith.constant 0 : i32
    %c0_i32_0 = arith.constant 0 : i32
    %c0_i32_1 = arith.constant 0 : i32
    return %c0_i32, %c0_i32_0 : i32, i32
  }
  func.func @transform_7(%arg0: i32) -> (i32, i32) {
    %c0_i32 = arith.constant 0 : i32
    %c0_i32_0 = arith.constant 0 : i32
    %c0_i32_1 = arith.constant 0 : i32
    return %c0_i32, %c0_i32_0 : i32, i32
  }
  func.func @transform_8(%arg0: i32) -> (i32, i32) {
    %c0_i32 = arith.constant 0 : i32
    %c0_i32_0 = arith.constant 0 : i32
    %c0_i32_1 = arith.constant 0 : i32
    return %c0_i32, %c0_i32_0 : i32, i32
  }
  func.func @transform_9(%arg0: i32) -> (i32, i32, i32) {
    %c0_i32 = arith.constant 0 : i32
    %c0_i32_0 = arith.constant 0 : i32
    %c0_i32_1 = arith.constant 0 : i32
    return %arg0, %c0_i32, %c0_i32_0 : i32, i32, i32
  }
}

</mosaic_0001>

<bundles_post_ra>
// kernel: tpu_custom_call.1
= control target key start
LH: loop header
LB: loop body
LE: loop exit
PB: predicated region body
PF: predicated region fallthrough
CT: control target
= control target key end

     0   :  { %s1617_s30 = smov 0   ;;  %s1816_s0 = inlined_call_operand.vmem [shape: bf16[2,16,64], index: 0, kind: input, shape index: {}]   ;;  %s1817_s1 = inlined_call_operand.vmem [shape: bf16[2,31,128], index: 1, kind: input, shape index: {}]   ;;  %s1818_s2 = inlined_call_operand.vmem [shape: bf16[2,31,16], index: 2, kind: input, shape index: {}]   ;;  %s1819_s3 = inlined_call_operand.vmem [shape: bf16[2,64,128], index: 3, kind: input, shape index: {}]   ;;  %s1820_s4 = inlined_call_operand.vmem [shape: bf16[3,128,64], index: 4, kind: input, shape index: {}]   ;;  %s1821_s5 = inlined_call_operand.vmem [shape: bf16[3,64,64], index: 5, kind: input, shape index: {}]   ;;  %s1822_s6 = inlined_call_operand.vmem [shape: f32[1,128], index: 6, kind: input, shape index: {}]   ;;  %s1823_s7 = inlined_call_operand.vmem [shape: f32[1,64], index: 7, kind: input, shape index: {}]   ;;  %s1824_s8 = inlined_call_operand.vmem [shape: f32[1,64], index: 8, kind: input, shape index: {}]   ;;  %s1825_s9 = inlined_call_operand.vmem [shape: f32[2,27,64], index: 9, kind: output, shape index: {}]  }
   0x1 LB: > { %s1192_s10 = sadd.s32 4294967295, %s1565_s30   ;;  %p1196_p0 = scmp.ge.s32.totalorder %s1565_s30, 1  ;;  %s1565_s30 = sphi %s1617_s30, %s19_s30  }
   0x2   : > { %p297_p1 = scmp.lt.s32.totalorder %s1565_s30, 3 }
   0x4   : > { %p298_p2 = pnand %p1196_p0, %p297_p1 }
   0x5   : > { %p338_p3 = scmp.lt.s32.totalorder (!%p298_p2), %s1192_s10, 1 }
   0x6   : > { %301 = sbr.rel (%p298_p2) target bundleno = 651 (0x28b), region = 56 }
   0xb   : > { %v1484_v0 = vld [vmem:[%s1819_s3 + $0x18] sm:$0xff]  ;;  %s1827_s10 = smov (!%p338_p3, %s1192_s10), 1  ;;  %v1479_v2 = vld [vmem:[%s1818_s2] sm:$0xff]  ;;  %v1485_v3 = vld [vmem:[%s1818_s2 + $0x10] sm:$0xff]  ;;  %vm392_vm0 = vcmask 130048   ;;  %vm452_vm1 = vcmask 523264  }
   0xc   : > { %463 = vmatpush.bf16.msra.mxu1 %v1484_v0  ;;  %s1475_s13 = sshll.u32 %s1827_s10, 3  ;;  %v1480_v4 = vld [vmem:[%s1818_s2 + $0x8] sm:$0xff]  ;;  %v1486_v5 = vld [vmem:[%s1818_s2 + $0x18] sm:$0xff]  ;;  %v1483_v6 = vld [vmem:[%s1819_s3 + $0x10] sm:$0xff]  ;;  %s1476_s14 = sshll.u32 %s1827_s10, 4  ;;  %vm816_vm2 = vcmask 1046528  }
   0xd   : > { %s342_s16 = scalar_lea.vmem %s1816_s0, %s1475_s13  ;;  %v1490_v7 = vld [vmem:[%s1819_s3 + $0x38] sm:$0xff]  ;;  %v1482_v8 = vld [vmem:[%s1819_s3 + $0x8] sm:$0xff]  ;;  %v1489_v9 = vld [vmem:[%s1819_s3 + $0x30] sm:$0xff]  ;;  %s1726_s19 = scalar_lea.vmem %s1817_s1, %s1476_s14  ;;  %vm710_vm3 = vsmask.f32 7424  ;;  %vm1123_vm4 = vcmask 518144  }
   0xe   : > { %v1478_v1 = vld [vmem:[%s342_s16] sm:$0xff]  ;;  %567 = vmatpush.bf16.msra.mxu3 %v1490_v7  ;;  %v1488_v11 = vld [vmem:[%s1819_s3 + $0x28] sm:$0xff]  ;;  %v1498_v14 = vld [vmem:[%s1820_s4 + $0x38] sm:$0xff]  ;;  %s1477_s26 = sshll.u32 %s1827_s10, 5 }
   0xf   : > { %406 = vmatpush.bf16.msra.mxu0 %v1478_v1  ;;  %510 = vmatpush.bf16.msra.mxu2 %v1478_v1  ;;  %v1481_v10 = vld [vmem:[%s1819_s3] sm:$0xff]  ;;  %v1497_v26 = vld [vmem:[%s1820_s4 + $0x30] sm:$0xff]  ;;  %v1496_v27 = vld [vmem:[%s1820_s4 + $0x28] sm:$0xff]  ;;  %s352_s29 = scalar_lea.vmem %s1825_s9, %s1477_s26 }
  0x10   : > { %464 = vmatpush.bf16.msra.mxu1 %v1483_v6  ;;  %v1487_v12 = vld [vmem:[%s1819_s3 + $0x20] sm:$0xff]  ;;  %v1494_v29 = vld [vmem:[%s1820_s4 + $0x18] sm:$0xff]  ;;  %v1493_v31 = vld [vmem:[%s1820_s4 + $0x10] sm:$0xff] }
  0x11   : > { %v1495_v28 = vld [vmem:[%s1820_s4 + $0x20] sm:$0xff]  ;;  %v1514_v30 = vld [vmem:[%s1820_s4 + $0xb8] sm:$0xff]  ;;  %v1513_v33 = vld [vmem:[%s1820_s4 + $0xb0] sm:$0xff] }
  0x12   : > { %1215 = vmatmul.msk.bf16.vlgmr.msra.gmra.mxu0 %vm392_vm0, %v1479_v2  ;;  %1247 = vmatmul.msk.bf16.vlgmr.msra.gmra.mxu2 %vm392_vm0, %v1485_v3  ;;  %v1506_v32 = vld [vmem:[%s1820_s4 + $0x78] sm:$0xff]  ;;  %v1492_v34 = vld [vmem:[%s1820_s4 + $0x8] sm:$0xff]  ;;  %v1505_v35 = vld [vmem:[%s1820_s4 + $0x70] sm:$0xff] }
  0x13   : > { %568 = vmatpush.bf16.msra.mxu3 %v1489_v9  ;;  %670 = vmatpush.bf16.msrb.mxu0 %v1498_v14  ;;  %v1512_v36 = vld [vmem:[%s1820_s4 + $0xa8] sm:$0xff]  ;;  %v1491_v37 = vld [vmem:[%s1820_s4] sm:$0xff]  ;;  %v1510_v41 = vld [vmem:[%s1820_s4 + $0x98] sm:$0xff] }
  0x14   : > { %465 = vmatpush.bf16.msra.mxu1 %v1482_v8  ;;  %776 = vmatpush.bf16.msrb.mxu2 %v1506_v32  ;;  %v1504_v38 = vld [vmem:[%s1820_s4 + $0x68] sm:$0xff]  ;;  %v1511_v39 = vld [vmem:[%s1820_s4 + $0xa0] sm:$0xff]  ;;  %v1502_v42 = vld [vmem:[%s1820_s4 + $0x58] sm:$0xff] }
  0x15   : > { %v1503_v40 = vld [vmem:[%s1820_s4 + $0x60] sm:$0xff]  ;;  %v1509_v44 = vld [vmem:[%s1820_s4 + $0x90] sm:$0xff]  ;;  %v1508_v49 = vld [vmem:[%s1820_s4 + $0x88] sm:$0xff] }
  0x16   : > { %v1528_v45 = vld [vmem:[%s1726_s19] sm:$0xff]   ;;  %v1501_v46 = vld [vmem:[%s1820_s4 + $0x50] sm:$0xff]  ;;  %v1500_v50 = vld [vmem:[%s1820_s4 + $0x48] sm:$0xff] }
  0x17   : > { %569 = vmatpush.bf16.msra.mxu3 %v1488_v11  ;;  %671 = vmatpush.bf16.msrb.mxu0 %v1497_v26  ;;  %v1529_v47 = vunpack.c.l.bf16 %v1528_v45  ;;  %v1556_v48 = vld [vmem:[%s1822_s6] ss:$0 sm:$0xff]  ;;  %v1530_v52 = vunpack.c.h.bf16 %v1528_v45  ;;  %v1535_v61 = vld [vmem:[%s1726_s19 + $0x8] sm:$0xff]  }
  0x18   : > { %466 = vmatpush.bf16.msra.mxu1 %v1481_v10  ;;  %777 = vmatpush.bf16.msrb.mxu2 %v1505_v35  ;;  %v1507_v53 = vld [vmem:[%s1820_s4 + $0x80] sm:$0xff]  ;;  %v1533_v2 = vunpack.c.l.bf16 %v1535_v61  ;;  %v1534_v8 = vunpack.c.h.bf16 %v1535_v61  ;;  %v1520_v45 = vld [vmem:[%s1821_s5 + $0x28] sm:$0xff] }
  0x19   : > { %v368_v51 = vadd.f32 %v1556_v48, %v1529_v47  ;;  %v1499_v56 = vld [vmem:[%s1820_s4 + $0x40] sm:$0xff]  ;;  %v369_v58 = vadd.f32 %v1556_v48, %v1530_v52 }
  0x1a   : > { %v370_v6 = vadd.f32 %v1556_v48, %v1533_v2  ;;  %v371_v11 = vadd.f32 %v1556_v48, %v1534_v8  ;;  %v1523_v47 = vld [vmem:[%s1821_s5 + $0x40] sm:$0xff] }
  0x1b   : > { %570 = vmatpush.bf16.msra.mxu3 %v1487_v12  ;;  %672 = vmatpush.bf16.msrb.mxu0 %v1496_v27  ;;  %v1557_v48 = vld [vmem:[%s1823_s7] ss:$0 sm:$0xff] }
  0x1c   : > { %870 = vmatpush.bf16.msrb.mxu1 %v1514_v30  ;;  %778 = vmatpush.bf16.msrb.mxu2 %v1504_v38 }
  0x1f   : > { %673 = vmatpush.bf16.msrb.mxu0 %v1495_v28  ;;  %1536 = vmatpush.bf16.msrb.mxu3 %v1506_v32 }
  0x20   : > { %871 = vmatpush.bf16.msrb.mxu1 %v1513_v33  ;;  %779 = vmatpush.bf16.msrb.mxu2 %v1503_v40 }
  0x22   : > { %1216 = vmatmul.msk.bf16.gmra.mxu0 %vm392_vm0, %v1480_v4  ;;  %1248 = vmatmul.msk.bf16.gmra.mxu2 %vm392_vm0, %v1486_v5 }
  0x23   : > { %674 = vmatpush.bf16.msrb.mxu0 %v1494_v29  ;;  %1537 = vmatpush.bf16.msrb.mxu3 %v1505_v35  ;;  %v1517_v35 = vld [vmem:[%s1821_s5 + $0x10] sm:$0xff] }
  0x24   : > { %872 = vmatpush.bf16.msrb.mxu1 %v1512_v36  ;;  %780 = vmatpush.bf16.msrb.mxu2 %v1502_v42 }
  0x27   : > { %675 = vmatpush.bf16.msrb.mxu0 %v1493_v31  ;;  %1538 = vmatpush.bf16.msrb.mxu3 %v1504_v38  ;;  %v1526_v38 = vld [vmem:[%s1821_s5 + $0x58] sm:$0xff] }
  0x28   : > { %873 = vmatpush.bf16.msrb.mxu1 %v1511_v39  ;;  %781 = vmatpush.bf16.msrb.mxu2 %v1501_v46  ;;  %v1522_v39 = vld [vmem:[%s1821_s5 + $0x38] sm:$0xff] }
  0x2b   : > { %676 = vmatpush.bf16.msrb.mxu0 %v1492_v34  ;;  %1539 = vmatpush.bf16.msrb.mxu3 %v1503_v40  ;;  %v1518_v34 = vld [vmem:[%s1821_s5 + $0x18] sm:$0xff]  ;;  %v1515_v40 = vld [vmem:[%s1821_s5] sm:$0xff] }
  0x2c   : > { %874 = vmatpush.bf16.msrb.mxu1 %v1510_v41  ;;  %782 = vmatpush.bf16.msrb.mxu2 %v1500_v50  ;;  %v1525_v41 = vld [vmem:[%s1821_s5 + $0x50] sm:$0xff] }
  0x2f   : > { %677 = vmatpush.bf16.msrb.mxu0 %v1491_v37  ;;  %1540 = vmatpush.bf16.msrb.mxu3 %v1502_v42  ;;  %v1516_v37 = vld [vmem:[%s1821_s5 + $0x8] sm:$0xff]  ;;  %v1521_v42 = vld [vmem:[%s1821_s5 + $0x30] sm:$0xff] }
  0x30   : > { %875 = vmatpush.bf16.msrb.mxu1 %v1509_v44  ;;  %783 = vmatpush.bf16.msrb.mxu2 %v1499_v56  ;;  %v1524_v44 = vld [vmem:[%s1821_s5 + $0x48] sm:$0xff] }
  0x33   : > { %1541 = vmatpush.bf16.msrb.mxu3 %v1501_v46  ;;  %1032 = vmatpush.bf16.msra.mxu0 %v1522_v39 }
  0x34   : > { %876 = vmatpush.bf16.msrb.mxu1 %v1508_v49  ;;  %1097 = vmatpush.bf16.msra.mxu2 %v1526_v38  ;;  %v1519_v49 = vld [vmem:[%s1821_s5 + $0x20] sm:$0xff] }
  0x37   : > { %1542 = vmatpush.bf16.msrb.mxu3 %v1500_v50  ;;  %1033 = vmatpush.bf16.msra.mxu0 %v1521_v42 }
  0x38   : > { %877 = vmatpush.bf16.msrb.mxu1 %v1507_v53  ;;  %1098 = vmatpush.bf16.msra.mxu2 %v1525_v41 }
  0x3b   : > { %1543 = vmatpush.bf16.msrb.mxu3 %v1499_v56  ;;  %1034 = vmatpush.bf16.msra.mxu0 %v1520_v45 }
  0x3c   : > { %1099 = vmatpush.bf16.msra.mxu2 %v1524_v44 }
  0x3f   : > { %1035 = vmatpush.bf16.msra.mxu0 %v1519_v49 }
  0x40   : > { %1100 = vmatpush.bf16.msra.mxu2 %v1523_v47 }
  0x8f   : > { %v408_v13 = vpop.f32.mrf.mxu0 }
  0x95   : > { %v512_v15 = vpop.f32.mrf.mxu2 }
  0x97   : > { %v410_v16 = vpop.f32.mrf.mxu0 }
  0x98   : > { %v418_v17 = vpack.c.bf16 %v410_v16, %v408_v13 }
  0x9a   : > { %1233 = vmatmul.msk.bf16.vlgmr.msra.gmra.mxu1 %vm452_vm1, %v418_v17 }
  0x9b   : > { %1544 = vmatpush.bf16.msra.mxu1 %v1522_v39 }
  0x9d   : > { %v514_v18 = vpop.f32.mrf.mxu2 }
  0x9e   : > { %v522_v19 = vpack.c.bf16 %v514_v18, %v512_v15 }
  0x9f   : > { %v413_v20 = vpop.f32.mrf.mxu0  ;;  %1545 = vmatpush.bf16.msra.mxu1 %v1521_v42 }
  0xa0   : > { %1273 = vmatmul.msk.bf16.vlgmr.msra.gmra.mxu3 %vm452_vm1, %v522_v19 }
  0xa1   : > { %957 = vmatpush.bf16.msra.mxu3 %v1518_v34  ;;  %v1558_v34 = vld [vmem:[%s1824_s8] ss:$0 sm:$0xff] }
  0xa3   : > { %1546 = vmatpush.bf16.msra.mxu1 %v1520_v45 }
  0xa5   : > { %v517_v21 = vpop.f32.mrf.mxu2  ;;  %958 = vmatpush.bf16.msra.mxu3 %v1517_v35 }
  0xa7   : > { %v415_v22 = vpop.f32.mrf.mxu0  ;;  %1547 = vmatpush.bf16.msra.mxu1 %v1519_v49 }
  0xa8   : > { %v419_v23 = vpack.c.bf16 %v415_v22, %v413_v20 }
  0xa9   : > { %959 = vmatpush.bf16.msra.mxu3 %v1516_v37 }
  0xaa   : > { %1234 = vmatmul.msk.bf16.gmra.mxu1 %vm452_vm1, %v419_v23 }
  0xad   : > { %v519_v24 = vpop.f32.mrf.mxu2  ;;  %960 = vmatpush.bf16.msra.mxu3 %v1515_v40 }
  0xae   : > { %v523_v25 = vpack.c.bf16 %v519_v24, %v517_v21 }
  0xb0   : > { %1274 = vmatmul.msk.bf16.gmra.mxu3 %vm452_vm1, %v523_v25 }
 0x117   : > { %v468_v43 = vpop.f32.mrf.mxu1 }
 0x118   : > { %v478_v57 = vadd.f32 %v468_v43, %v368_v51 }
 0x11f   : > { %v470_v54 = vpop.f32.mrf.mxu1 }
 0x120   : > { %v479_v60 = vadd.f32 %v470_v54, %v369_v58 }
 0x123   : > { %v572_v55 = vpop.f32.mrf.mxu3 }
 0x124   : > { %v582_v59 = vadd.f32 %v572_v55, %v478_v57 }
 0x126   : > { %v586_v63 = vpack.c.bf16 %v582_v59, %v582_v59 }
 0x127   : > { %v473_v1 = vpop.f32.mrf.mxu1 }
 0x128   : > { %v614_v4 = vunpack.c.l.b16 %v586_v63  ;;  %v480_v10 = vadd.f32 %v473_v1, %v370_v6 }
 0x12b   : > { %v574_v62 = vpop.f32.mrf.mxu3 }
 0x12c   : > { %v583_v0 = vadd.f32 %v574_v62, %v479_v60 }
 0x12e   : > { %v587_v3 = vpack.c.bf16 %v583_v0, %v583_v0 }
 0x12f   : > { %v475_v12 = vpop.f32.mrf.mxu1 }
 0x130   : > { %v615_v5 = vunpack.c.l.b16 %v587_v3  ;;  %v481_v14 = vadd.f32 %v475_v12, %v371_v11 }
 0x132   : > { %v618_v7 = vpack.c.b16 %v615_v5, %v614_v4 }
 0x133   : > { %v577_v9 = vpop.f32.mrf.mxu3 }
 0x134   : > { %678 = vmatmul.bf16.vlgmr.msrb.gmra.mxu0 %v618_v7  ;;  %v584_v13 = vadd.f32 %v577_v9, %v480_v10  ;;  %v714_v19 = vshll.u32 %v618_v7, 16  ;;  %v817_v24 = vrot.slane %v618_v7, 1  ;;  %v712_v26 = vshrl.u32 %v618_v7, 16 }
 0x136   : > { %v588_v16 = vpack.c.bf16 %v584_v13, %v584_v13  ;;  %v716_v23 = vrot.slane %v714_v19, 1 }
 0x138   : > { %v616_v20 = vunpack.c.l.b16 %v588_v16  ;;  %v717_v29 = vor.u32 %v716_v23, %v712_v26 }
 0x13b   : > { %v579_v15 = vpop.f32.mrf.mxu3 }
 0x13c   : > { %v585_v17 = vadd.f32 %v579_v15, %v481_v14 }
 0x13e   : > { %v589_v18 = vpack.c.bf16 %v585_v17, %v585_v17 }
 0x140   : > { %v617_v21 = vunpack.c.l.b16 %v589_v18 }
 0x142   : > { %v619_v22 = vpack.c.b16 %v617_v21, %v616_v20 }
 0x144   : > { %683 = vmatmul.bf16.gmra.mxu0 %v619_v22  ;;  %v818_v25 = vrot.slane %v619_v22, 1  ;;  %v719_v27 = vshll.u32 %v619_v22, 16  ;;  %v723_v31 = vshrl.u32 %v619_v22, 16 }
 0x146   : > { %v819_v28 = vsel %vm816_vm2, %v817_v24, %v818_v25  ;;  %v721_v30 = vrot.slane %v719_v27, 1 }
 0x147   : > { %878 = vmatmul.bf16.vlgmr.msrb.gmra.mxu1 %v819_v28 }
 0x148   : > { %v722_v32 = vsel %vm710_vm3, %v717_v29, %v721_v30  ;;  %v725_v33 = vor.u32 %v723_v31, %v721_v30 }
 0x149   : > { %784 = vmatmul.bf16.vlgmr.msrb.gmra.mxu2 %v722_v32 }
 0x14a   : > { %789 = vmatmul.bf16.vlgmr.msrb.gmra.mxu3 %v725_v33 }
 0x157   : > { %883 = vmatmul.bf16.gmra.mxu1 %v818_v25 }
 0x1b1   : > { %v679_v36 = vpop.f32.mrf.mxu0 }
 0x1b2   : > { %v689_v50 = vadd.f32 %v1557_v48, %v679_v36 }
 0x1b9   : > { %v681_v43 = vpop.f32.mrf.mxu0 }
 0x1ba   : > { %v690_v57 = vadd.f32 %v1557_v48, %v681_v43 }
 0x1c1   : > { %v684_v51 = vpop.f32.mrf.mxu0 }
 0x1c2   : > { %v691_v58 = vadd.f32 %v1557_v48, %v684_v51 }
 0x1c4   : > { %v879_v46 = vpop.f32.mrf.mxu1 }
 0x1c9   : > { %v686_v0 = vpop.f32.mrf.mxu0 }
 0x1ca   : > { %v692_v4 = vadd.f32 %v1557_v48, %v686_v0 }
 0x1cc   : > { %v785_v52 = vpop.f32.mrf.mxu2  ;;  %v881_v53 = vpop.f32.mrf.mxu1 }
 0x1cd   : > { %v795_v54 = vadd.f32 %v785_v52, %v689_v50  ;;  %v790_v55 = vpop.f32.mrf.mxu3 }
 0x1ce   : > { %v797_v62 = vadd.f32 %v790_v55, %v691_v58 }
 0x1cf   : > { %v889_v56 = vadd.f32 %v879_v46, %v795_v54 }
 0x1d1   : > { %v893_v61 = vmax.f32 %v889_v56, 0.0 }
 0x1d3   : > { %v897_v5 = vpack.c.bf16 %v893_v61, %v893_v61 }
 0x1d4   : > { %v787_v59 = vpop.f32.mrf.mxu2  ;;  %v884_v60 = vpop.f32.mrf.mxu1 }
 0x1d5   : > { %v796_v63 = vadd.f32 %v787_v59, %v690_v57  ;;  %v891_v2 = vadd.f32 %v884_v60, %v797_v62  ;;  %v792_v3 = vpop.f32.mrf.mxu3  ;;  %v917_v11 = vunpack.c.l.b16 %v897_v5 }
 0x1d6   : > { %v798_v9 = vadd.f32 %v792_v3, %v692_v4 }
 0x1d7   : > { %v890_v1 = vadd.f32 %v881_v53, %v796_v63  ;;  %v895_v8 = vmax.f32 %v891_v2, 0.0 }
 0x1d9   : > { %v894_v6 = vmax.f32 %v890_v1, 0.0  ;;  %v899_v15 = vpack.c.bf16 %v895_v8, %v895_v8 }
 0x1db   : > { %v898_v7 = vpack.c.bf16 %v894_v6, %v894_v6  ;;  %v919_v19 = vunpack.c.l.b16 %v899_v15 }
 0x1dc   : > { %v886_v10 = vpop.f32.mrf.mxu1 }
 0x1dd   : > { %v918_v12 = vunpack.c.l.b16 %v898_v7  ;;  %v892_v13 = vadd.f32 %v886_v10, %v798_v9 }
 0x1df   : > { %v921_v14 = vpack.c.b16 %v918_v12, %v917_v11  ;;  %v896_v16 = vmax.f32 %v892_v13, 0.0 }
 0x1e1   : > { %v900_v17 = vpack.c.bf16 %v896_v16, %v896_v16  ;;  %1419 = vmatmul.msk.bf16.vlgmr.msra.gmra.mxu3 %vm452_vm1, %v921_v14  ;;  %v987_v18 = vshll.u32 %v921_v14, 16  ;;  %v1060_v23 = vrot.slane %v921_v14, 1  ;;  %v985_v25 = vshrl.u32 %v921_v14, 16 }
 0x1e3   : > { %v920_v20 = vunpack.c.l.b16 %v900_v17  ;;  %v989_v22 = vrot.slane %v987_v18, 1 }
 0x1e5   : > { %v922_v21 = vpack.c.b16 %v920_v20, %v919_v19  ;;  %v990_v29 = vor.u32 %v989_v22, %v985_v25 }
 0x1e7   : > { %v1061_v24 = vrot.slane %v922_v21, 1  ;;  %v991_v26 = vshll.u32 %v922_v21, 16  ;;  %v995_v27 = vshrl.u32 %v922_v21, 16 }
 0x1e9   : > { %v1062_v28 = vsel %vm816_vm2, %v1060_v23, %v1061_v24  ;;  %v993_v30 = vrot.slane %v991_v26, 1 }
 0x1ea   : > { %1471 = vmatmul.msk.bf16.vlgmr.msra.gmra.mxu2 %vm452_vm1, %v1062_v28 }
 0x1eb   : > { %v994_v31 = vsel %vm710_vm3, %v990_v29, %v993_v30  ;;  %v997_v32 = vor.u32 %v995_v27, %v993_v30 }
 0x1ec   : > { %1445 = vmatmul.msk.bf16.vlgmr.msra.gmra.mxu0 %vm452_vm1, %v994_v31 }
 0x1ed   : > { %1446 = vmatmul.msk.bf16.vlgmr.msra.gmra.mxu1 %vm452_vm1, %v997_v32 }
 0x1f1   : > { %1420 = vmatmul.msk.bf16.gmra.mxu3 %vm452_vm1, %v922_v21 }
 0x1fa   : > { %1472 = vmatmul.msk.bf16.gmra.mxu2 %vm452_vm1, %v1061_v24 }
 0x264   : > { %v962_v33 = vpop.f32.mrf.mxu3 }
 0x265   : > { %v972_v36 = vadd.f32 %v1558_v34, %v962_v33 }
 0x269   : > { %v1037_v35 = vpop.f32.mrf.mxu0 }
 0x26a   : > { %v1047_v37 = vadd.f32 %v1037_v35, %v972_v36  ;;  %v1042_v50 = vpop.f32.mrf.mxu1 }
 0x26c   : > { %v964_v38 = vpop.f32.mrf.mxu3 }
 0x26d   : > { %v1102_v39 = vpop.f32.mrf.mxu2  ;;  %v973_v43 = vadd.f32 %v1558_v34, %v964_v38 }
 0x26e   : > { %v1112_v40 = vadd.f32 %v1102_v39, %v1047_v37 }
 0x270   : > { %v1116_v41 = vmax.f32 %v1112_v40, 0.0 }
 0x271   : > { %v1039_v42 = vpop.f32.mrf.mxu0 }
 0x272   : > { %1120 = vst.msk [vmem:[%s352_s29] sm:$0xff] %vm452_vm1, %v1116_v41  ;;  %v1048_v44 = vadd.f32 %v1039_v42, %v973_v43  ;;  %v1044_v57 = vpop.f32.mrf.mxu1 }
 0x274   : > { %v967_v45 = vpop.f32.mrf.mxu3 }
 0x275   : > { %v1104_v46 = vpop.f32.mrf.mxu2  ;;  %v974_v48 = vadd.f32 %v1558_v34, %v967_v45 }
 0x276   : > { %v1113_v47 = vadd.f32 %v1104_v46, %v1048_v44 }
 0x277   : > { %v1049_v51 = vadd.f32 %v1042_v50, %v974_v48 }
 0x278   : > { %v1117_v49 = vmax.f32 %v1113_v47, 0.0 }
 0x27a   : > { %1121 = vst.msk [vmem:[%s352_s29 + $0x8] sm:$0xff] %vm452_vm1, %v1117_v49 }
 0x27c   : > { %v969_v52 = vpop.f32.mrf.mxu3 }
 0x27d   : > { %v1107_v53 = vpop.f32.mrf.mxu2  ;;  %v975_v55 = vadd.f32 %v1558_v34, %v969_v52 }
 0x27e   : > { %v1114_v54 = vadd.f32 %v1107_v53, %v1049_v51 }
 0x27f   : > { %v1050_v58 = vadd.f32 %v1044_v57, %v975_v55 }
 0x280   : > { %v1118_v56 = vmax.f32 %v1114_v54, 0.0 }
 0x282   : > { %1122 = vst.msk [vmem:[%s352_s29 + $0x10] sm:$0xff] %vm452_vm1, %v1118_v56 }
 0x285   : > { %v1109_v59 = vpop.f32.mrf.mxu2 }
 0x286   : > { %v1115_v60 = vadd.f32 %v1109_v59, %v1050_v58 }
 0x288   : > { %v1119_v61 = vmax.f32 %v1115_v60, 0.0 }
 0x28a   : > { %1124 = vst.msk [vmem:[%s352_s29 + $0x18] sm:$0x7] %vm1123_vm4, %v1119_v61 }
 0x28b PF: > { %s19_s30 = sadd.s32 1, %s1565_s30  }
 0x28c   : > { %p16_p4 = scmp.ge.s32.totalorder %s19_s30, 4  }
 0x28e   :  { %18 = sbr.rel (!%p16_p4) target bundleno = 1 (0x1), region = 95 }

</bundles_post_ra>
